<compile_context>
chip_gen: v7x
topology: tpu7x:2x2x1
jax: 0.10.0
libtpu: 0.0.40
codegen_flags: <defaults>
</compile_context>

<pallas_src>
import functools

import jax
import jax.numpy as jnp
import numpy as np
from jax.experimental import pallas as pl
from jax.experimental.pallas import tpu as pltpu


def _conv_matmul_relu_kernel(w_ref, x_ref, b_ref, o_ref):
    # w_ref: (C_out, K)   x_ref: (K, tm)   b_ref: (C_out, 1)   o_ref: (C_out, tm)
    acc = jnp.dot(w_ref[...], x_ref[...], preferred_element_type=jnp.float32)
    acc = acc + b_ref[...]                      # (C_out, 1) broadcasts over lanes
    o_ref[...] = jnp.maximum(acc, 0.0).astype(o_ref.dtype)


def _vmem_limit_bytes():
    """Per-generation VMEM limit: ~3/4 of physical, capped at 96 MiB.
    v5e/v6e (128 MiB) -> 96 MiB; v7x (64 MiB) -> 48 MiB; unknown -> 48 MiB."""
    default_cap = 64 * 1024 * 1024              # conservative (v7x-sized) physical default
    try:
        cap = int(getattr(pltpu.get_tpu_info(), "vmem_capacity_bytes", 0))
    except Exception:
        cap = 0
    if cap < default_cap:
        cap = default_cap
    return min(cap * 3 // 4, 96 * 1024 * 1024)


def _pick_m_tiling(mn, tm_cap, n_batch):
    """Tile the per-sample M axis (Do*Ho*Wo).

    Returns (tm, grid_m, mn_pad) with tm*grid_m == mn_pad >= mn and tm <= tm_cap lanes.
    Prefers: (a) exact 128-multiple divisors of mn (no pad / no final slice),
             (b) a single full-row block when mn is ragged but fits VMEM,
             (c) minimal pad-to-128 tiling otherwise.
    Aims for ~8 total grid steps (N * grid_m) so DMA stays pipelined and v7x megacore
    has work on both TensorCores, without creating hundreds of tiny steps."""
    lanes = pl.cdiv(mn, 128)                    # M in 128-lane units (ceil)
    cap_l = max(1, tm_cap // 128)
    if mn % 128 == 0:
        g_min = pl.cdiv(lanes, cap_l)                          # hard VMEM bound
        g_tgt = max(g_min, min(lanes, pl.cdiv(8, n_batch)))    # ~8 total steps
        for g in range(g_tgt, min(4 * g_tgt, lanes) + 1):      # prefer exact divisor
            if lanes % g == 0:
                return (lanes // g) * 128, g, mn
        tm = pl.cdiv(lanes, g_tgt) * 128
        return tm, g_tgt, g_tgt * tm
    if mn <= tm_cap:
        # Ragged but small: one full-row block (block dim == array dim, so no 128 rule,
        # no pad, no final slice).
        return mn, 1, mn
    # Ragged and large: pad to a 128 multiple and tile (final slice needed).
    g = max(pl.cdiv(lanes, cap_l), min(lanes, pl.cdiv(8, n_batch)))
    tm = pl.cdiv(lanes, g) * 128
    return tm, g, g * tm


def _patch_matmul_relu(w_t, patches, b_col, *, out_dtype):
    """out[n] = relu(w_t @ patches[n] + b):  (C_out,K) @ (N,K,Mn) -> (N,C_out,Mn)."""
    N, K, Mn = patches.shape
    C_out = w_t.shape[0]

    vmem_limit = _vmem_limit_bytes()
    in_b = patches.dtype.itemsize
    out_b = np.dtype(out_dtype).itemsize
    # Double-buffered input + output bytes per lane-column of a tile (weights/bias tiny).
    bytes_per_lane = 2 * (K * in_b + C_out * out_b)
    tm_cap = max(128, int(vmem_limit * 0.8) // bytes_per_lane // 128 * 128)

    tm, grid_m, mn_pad = _pick_m_tiling(Mn, tm_cap, N)
    if mn_pad != Mn:
        patches = jnp.pad(patches, ((0, 0), (0, 0), (0, mn_pad - Mn)))

    cost = pl.CostEstimate(
        flops=2 * N * Mn * K * C_out,
        transcendentals=0,
        bytes_accessed=(N * mn_pad * K * in_b
                        + C_out * K * w_t.dtype.itemsize
                        + C_out * 4
                        + N * mn_pad * C_out * out_b),
    )

    out = pl.pallas_call(
        _conv_matmul_relu_kernel,
        out_shape=jax.ShapeDtypeStruct((N, C_out, mn_pad), out_dtype),
        grid_spec=pltpu.PrefetchScalarGridSpec(
            num_scalar_prefetch=0,
            grid=(N, grid_m),
            in_specs=[
                pl.BlockSpec((C_out, K), lambda n, i: (0, 0)),        # weights: resident
                pl.BlockSpec((None, K, tm), lambda n, i: (n, 0, i)),  # lane-dense act tile
                pl.BlockSpec((C_out, 1), lambda n, i: (0, 0)),        # bias: resident
            ],
            out_specs=pl.BlockSpec((None, C_out, tm), lambda n, i: (n, 0, i)),  # lane-dense
        ),
        compiler_params=pltpu.CompilerParams(
            dimension_semantics=("parallel", "parallel"),
            vmem_limit_bytes=vmem_limit,
        ),
        cost_estimate=cost,
    )(w_t, patches, b_col)

    if mn_pad != Mn:
        out = out[:, :, :Mn]
    return out


def downsampling_conv_block(x, weight, bias, stride=2,
                            compute_dtype=jnp.bfloat16, out_dtype=None):
    """Forward pass of DownsamplingConvBlock (normalization='none').

    x:      (N, C_in, D, H, W)          float32
    weight: (C_out, C_in, s, s, s)      float32  (PyTorch Conv3d layout)
    bias:   (C_out,)                    float32
    returns (N, C_out, D//s, H//s, W//s) in out_dtype (default: x.dtype)
    """
    s = stride
    N, C_in, D, H, W = x.shape
    C_out = weight.shape[0]
    Do, Ho, Wo = D // s, H // s, W // s
    K = C_in * s * s * s
    Mn = Do * Ho * Wo
    out_dtype = x.dtype if out_dtype is None else out_dtype

    # --- glue: im2col (cast BEFORE the transpose so the relayout pass moves bf16 bytes) ---
    xc = x.astype(compute_dtype)
    xp = xc.reshape(N, C_in, Do, s, Ho, s, Wo, s)
    # -> (N, C_in, kd, kh, kw, Do, Ho, Wo): K on sublanes, per-sample M on lanes (n-major).
    xp = xp.transpose(0, 1, 3, 5, 7, 2, 4, 6)
    patches = xp.reshape(N, K, Mn)
    # TODO(synk): fuse this gather into the kernel (in-kernel strided relayout / input
    # fusion) to remove the remaining extra HBM pass over the activations.

    # Conv weight (C_out, C_in, s, s, s) flattens directly to (C_out, K), K ordered
    # (ci, kd, kh, kw) to match the patch ordering above.
    w_t = weight.reshape(C_out, K).astype(compute_dtype)
    b_col = bias.reshape(C_out, 1).astype(jnp.float32)

    # --- hot path: matmul + bias + ReLU in Pallas (lane-dense input and output) ---
    out = _patch_matmul_relu(w_t, patches, b_col, out_dtype=out_dtype)

    # --- metadata-only: (N, C_out, Mn) -> NCDHW, no transpose needed ---
    return out.reshape(N, C_out, Do, Ho, Wo)


def _reference(x, weight, bias, stride=2):
    # lax conv reference for verification (NCDHW / OIDHW)
    y = jax.lax.conv_general_dilated(
        x, weight,
        window_strides=(stride, stride, stride),
        padding="VALID",
        dimension_numbers=("NCDHW", "OIDHW", "NCDHW"),
    )
    y = y + bias.reshape(1, -1, 1, 1, 1)
    return jnp.maximum(y, 0.0)


if __name__ == "__main__":
    key = jax.random.PRNGKey(0)
    k_x, k_w, k_b = jax.random.split(key, 3)

    # Small shapes consistent with the module: n_filters_in=4, n_filters_out=8, stride=2
    N, C_in, C_out, D, H, W, s = 2, 4, 8, 8, 8, 8, 2

    x = jax.random.normal(k_x, (N, C_in, D, H, W), dtype=jnp.float32)
    fan_in = C_in * s * s * s
    weight = jax.random.normal(k_w, (C_out, C_in, s, s, s), dtype=jnp.float32) / jnp.sqrt(fan_in)
    bias = jax.random.normal(k_b, (C_out,), dtype=jnp.float32) * 0.01

    ref = _reference(x, weight, bias, stride=s)

    # f32 path: tight check of kernel structure / layout correctness.
    fwd_f32 = jax.jit(functools.partial(downsampling_conv_block, stride=s,
                                        compute_dtype=jnp.float32))
    out_f32 = jax.block_until_ready(fwd_f32(x, weight, bias))
    assert out_f32.shape == (N, C_out, D // s, H // s, W // s), out_f32.shape
    assert jnp.allclose(out_f32, ref, atol=1e-5, rtol=1e-5), \
        float(jnp.max(jnp.abs(out_f32 - ref)))

    # bf16 path (default, bandwidth-optimized): loosened tolerance.
    fwd_bf16 = jax.jit(functools.partial(downsampling_conv_block, stride=s,
                                         compute_dtype=jnp.bfloat16))
    out_bf16 = jax.block_until_ready(fwd_bf16(x, weight, bias))
    assert out_bf16.shape == (N, C_out, D // s, H // s, W // s), out_bf16.shape
    assert jnp.allclose(out_bf16, ref, atol=5e-2, rtol=5e-2), \
        float(jnp.max(jnp.abs(out_bf16 - ref)))

    print("KERNEL_OK")
</pallas_src>

<mosaic_0001>
module attributes {stable_mosaic.version = 11 : i64} {
  func.func @_conv_matmul_relu_kernel(%arg0: i32, %arg1: i32, %arg2: memref<8x32xf32, #tpu.memory_space<vmem>>, %arg3: memref<1x32x64xf32, #tpu.memory_space<vmem>>, %arg4: memref<8x1xf32, #tpu.memory_space<vmem>>, %arg5: memref<1x8x64xf32, #tpu.memory_space<vmem>>) attributes {dimension_semantics = [#tpu.dimension_semantics<parallel>, #tpu.dimension_semantics<parallel>], iteration_bounds = array<i64: 2, 1>, scalar_prefetch = 0 : i64, scratch_operands = 0 : i64, tpu.core_type = #tpu.core_type<tc>, window_params = [{pipeline_mode = #tpu.pipeline_mode<synchronous>, transform_indices = @transform_0, window_bounds = array<i64: 8, 32>}, {transform_indices = @transform_1, window_bounds = array<i64: 1, 32, 64>}, {pipeline_mode = #tpu.pipeline_mode<synchronous>, transform_indices = @transform_2, window_bounds = array<i64: 8, 1>}, {transform_indices = @transform_3, window_bounds = array<i64: 1, 8, 64>}]} {
    %c0 = arith.constant 0 : index
    %c0_0 = arith.constant 0 : index
    %0 = vector.load %arg2[%c0, %c0_0] : memref<8x32xf32, #tpu.memory_space<vmem>>, vector<8x32xf32>
    %c0_1 = arith.constant 0 : index
    %c0_2 = arith.constant 0 : index
    %c0_3 = arith.constant 0 : index
    %1 = vector.load %arg3[%c0_1, %c0_2, %c0_3] : memref<1x32x64xf32, #tpu.memory_space<vmem>>, vector<1x32x64xf32>
    %2 = vector.shape_cast %1 : vector<1x32x64xf32> to vector<32x64xf32>
    %cst = arith.constant dense<0.000000e+00> : vector<8x64xf32>
    %3 = tpu.matmul %0, %2, %cst {dimension_numbers = #tpu.dot_dimension_numbers<[1], [0], [0], [1], [0, 0, 1, 1], [], []>} : vector<8x32xf32>, vector<32x64xf32>, vector<8x64xf32> -> vector<8x64xf32>
    %c0_4 = arith.constant 0 : index
    %c0_5 = arith.constant 0 : index
    %4 = vector.load %arg4[%c0_4, %c0_5] : memref<8x1xf32, #tpu.memory_space<vmem>>, vector<8x1xf32>
    %5 = vector.broadcast %4 : vector<8x1xf32> to vector<8x64xf32>
    %6 = arith.addf %3, %5 : vector<8x64xf32>
    %cst_6 = arith.constant 0.000000e+00 : f32
    %7 = vector.broadcast %cst_6 : f32 to vector<8x64xf32>
    %8 = arith.maximumf %6, %7 : vector<8x64xf32>
    %c0_7 = arith.constant 0 : index
    %c0_8 = arith.constant 0 : index
    %c0_9 = arith.constant 0 : index
    %9 = vector.load %arg5[%c0_7, %c0_8, %c0_9] : memref<1x8x64xf32, #tpu.memory_space<vmem>>, vector<1x8x64xf32>
    %10 = vector.shape_cast %9 : vector<1x8x64xf32> to vector<8x64xf32>
    %11 = vector.shape_cast %8 : vector<8x64xf32> to vector<1x8x64xf32>
    tpu.vector_store %arg5[%c0_7, %c0_8, %c0_9], %11 {strides = array<i32>} : memref<1x8x64xf32, #tpu.memory_space<vmem>>, vector<1x8x64xf32>,
    return
  }
  func.func @transform_0(%arg0: i32, %arg1: i32) -> (i32, i32) {
    %c0_i32 = arith.constant 0 : i32
    %c0_i32_0 = arith.constant 0 : i32
    %c0_i32_1 = arith.constant 0 : i32
    return %c0_i32, %c0_i32_0 : i32, i32
  }
  func.func @transform_1(%arg0: i32, %arg1: i32) -> (i32, i32, i32) {
    %c0_i32 = arith.constant 0 : i32
    %c0_i32_0 = arith.constant 0 : i32
    return %arg0, %c0_i32, %arg1 : i32, i32, i32
  }
  func.func @transform_2(%arg0: i32, %arg1: i32) -> (i32, i32) {
    %c0_i32 = arith.constant 0 : i32
    %c0_i32_0 = arith.constant 0 : i32
    %c0_i32_1 = arith.constant 0 : i32
    return %c0_i32, %c0_i32_0 : i32, i32
  }
  func.func @transform_3(%arg0: i32, %arg1: i32) -> (i32, i32, i32) {
    %c0_i32 = arith.constant 0 : i32
    %c0_i32_0 = arith.constant 0 : i32
    return %arg0, %c0_i32, %arg1 : i32, i32, i32
  }
}

</mosaic_0001>

<bundles_post_ra>
// kernel: downsampling_conv_block.1
= control target key start
LH: loop header
LB: loop body
LE: loop exit
PB: predicated region body
PF: predicated region fallthrough
CT: control target
= control target key end

     0   :  { %s476_s12 = smov 0   ;;  %s478_s13 = smov 0   ;;  %s515_s0 = inlined_call_operand.vmem [shape: f32[8,32], index: 0, kind: input, shape index: {}]   ;;  %s516_s1 = inlined_call_operand.vmem [shape: f32[2,32,64], index: 1, kind: input, shape index: {}]   ;;  %s517_s2 = inlined_call_operand.vmem [shape: f32[8,1], index: 2, kind: input, shape index: {}]   ;;  %s518_s3 = inlined_call_operand.vmem [shape: f32[2,8,64], index: 3, kind: output, shape index: {}]  }
   0x1   :  { %s480_s14 = smov 0  }
   0x2 LB: > { %s25_s15 = sadd.s32 1, %s446_s13  ;;  %p369_p0 = scmp.ge.s32.totalorder %s450_s14, 1  ;;  %s450_s14 = sphi %s480_s14, %s13_s14   ;;  %s446_s13 = sphi %s478_s13, %s520_s13   ;;  %s442_s12 = sphi %s476_s12, %s519_s12  }
   0x3   : > { %p27_p1 = scmp.ge.s32.totalorder %s25_s15, 2  ;;  %p156_p2 = scmp.lt.s32.totalorder %s450_s14, 3 }
   0x5   : > { %s522_s15 = smov (%p27_p1, %s25_s15), 0  ;;  %p157_p3 = pnand %p369_p0, %p156_p2 }
   0x6   : > { %p185_p4 = scmp.lt.s32.totalorder (!%p157_p3), %s442_s12, 1  ;;  %v452_v0 = vmov (!%p157_p3), 0.0|0.0   ;;  %vm453_vm0 = vmmov (!%p157_p3), 0   ;;  %v454_v1 = vmov (!%p157_p3), 0.0   ;;  %v205_v2 = vld [vmem:[%s517_s2] sm:$0xff] (!%p157_p3)  ;;  %v455_v3 = vmov (!%p157_p3), 0  }
   0x7   : > { %160 = sbr.rel (%p157_p3) target bundleno = 244 (0xf4), region = 32  ;;  %393 = vmatprep.subr.bf16.mxu0 (!%p157_p3), %v452_v0  ;;  %390 = vmatprep.mubr.msk.f32.mxu0 (!%p157_p3), %vm453_vm0, %v454_v1  ;;  %v200_v10 = vld [vmem:[%s515_s0] sm:$0xff] (!%p157_p3)  ;;  %vm211_vm1 = vcmask (!%p157_p3), 261120   ;;  %vm286_vm2 = vcmask (!%p157_p3), 523264  }
   0x8   : > { %427 = vset.pattern.permute.xlu0 (!%p157_p3), %v455_v3 }
   0x9   : > { %208 = vperm.xlu0 (!%p157_p3), %427, %v205_v2  }
   0xe   : > { %s524_s12 = smov (!%p185_p4, %s442_s12), 1 }
   0xf   : > { %s376_s18 = sshll.u32 %s524_s12, 5  ;;  %s372_s24 = sshll.u32 %s524_s12, 3 }
  0x10   : > { %s192_s21 = scalar_lea.vmem %s516_s1, %s376_s18  ;;  %s199_s27 = scalar_lea.vmem %s518_s3, %s372_s24 }
  0x11   : > { %v201_v4 = vld [vmem:[%s192_s21] sm:$0xff]  ;;  %v202_v5 = vld [vmem:[%s192_s21 + $0x8] sm:$0xff]  ;;  %v203_v6 = vld [vmem:[%s192_s21 + $0x10] sm:$0xff] }
  0x12   : > { %v394_v7 = vpack.c.bf16 %v202_v5, %v201_v4  ;;  %v204_v8 = vld [vmem:[%s192_s21 + $0x18] sm:$0xff] }
  0x13   : > { %v397_v9 = vpack.c.bf16 %v204_v8, %v203_v6 }
  0x14   : > { %395 = vmatpush3.bf16.msra.mxu0 %v394_v7 }
  0x15   : > { %396 = vmatprep.subr.bf16.mxu0 %v452_v0 }
  0x18   : > { %398 = vmatpush3.bf16.msra.mxu0 %v397_v9 }
  0x1b   : > { %391 = vmatmul.mubr.msk.f32.vlgmr.msra.gmra.mrb[0].mxu0 %vm211_vm1, %v200_v10 }
  0x88   : > { %v209_v11 = vpop.permute.xlu0 %208 }
  0xee   : > { %v281_v12 = vpop.f32.mrb[0].mxu0 }
  0xef   : > { %v282_v13 = vadd.f32 %v281_v12, %v209_v11  ;;  %v392_v14 = vpop.f32.mrb[1].mxu0 }
  0xf1   : > { %v285_v15 = vmax.f32 %v282_v13, 0.0 }
  0xf3   : > { %287 = vst.msk [vmem:[%s199_s27] sm:$0xff] %vm286_vm2, %v285_v15 }
  0xf4 PF: > { %s13_s14 = sadd.s32 1, %s450_s14   ;;  %s519_s12 = smov %s446_s13 }
  0xf5   : > { %p10_p5 = scmp.ge.s32.totalorder %s13_s14, 4   ;;  %s520_s13 = smov %s522_s15 }
  0xf7   :  { %12 = sbr.rel (!%p10_p5) target bundleno = 2 (0x2), region = 62 }

</bundles_post_ra>
